<compile_context>
chip_gen: v7x
topology: tpu7x:2x2x1
jax: 0.10.0
libtpu: 0.0.40
codegen_flags: <defaults>
</compile_context>

<pallas_src>
import functools

import numpy as np
import jax
import jax.numpy as jnp
from jax import lax
from jax.experimental import pallas as pl
from jax.experimental.pallas import tpu as pltpu


def _round_up(x: int, m: int) -> int:
    return ((x + m - 1) // m) * m


# --------------------------------------------------------------------------- #
# Kernel math (shared by the single-step and in-kernel-scan variants)
# --------------------------------------------------------------------------- #
def _cell_math(xi, y, wv_xi_ref, wv_y_ref, bv_ref,
               w2_xi_ref, w2_w_ref, w2_y_ref, b2_ref, *, nonlinearity, nu):
    """One RobustRNNCell step on a (TB, ...) batch tile.  Returns (u, xi_new)."""
    wdt = wv_xi_ref.dtype
    # Hoisted casts: each activation is cast to the weight dtype exactly once.
    xi_c = xi.astype(wdt)
    y_c = y.astype(wdt)

    # v = W_v([xi, y]) with the concat removed by splitting the dot per input.
    v = (jnp.dot(xi_c, wv_xi_ref[...], preferred_element_type=jnp.float32)
         + jnp.dot(y_c, wv_y_ref[...], preferred_element_type=jnp.float32)
         + bv_ref[...])

    if nonlinearity == "tanh":
        w = jnp.tanh(v)                      # EUP, overlaps MXU work
    elif nonlinearity == "relu":
        w = jnp.maximum(v, 0.0)
    else:
        w = v

    # [u | xi'] = xi@W2_xi + w@W2_w + y@W2_y + [b_u | b_xi]   (no log_std cols)
    out = (jnp.dot(xi_c, w2_xi_ref[...], preferred_element_type=jnp.float32)
           + jnp.dot(w.astype(wdt), w2_w_ref[...], preferred_element_type=jnp.float32)
           + jnp.dot(y_c, w2_y_ref[...], preferred_element_type=jnp.float32)
           + b2_ref[...])
    return out[:, :nu], out[:, nu:]


def _cell_kernel(xi_ref, y_ref, wv_xi_ref, wv_y_ref, bv_ref,
                 w2_xi_ref, w2_w_ref, w2_y_ref, b2_ref,
                 u_ref, xi_out_ref, *, nonlinearity, nu):
    u, xi_new = _cell_math(xi_ref[...], y_ref[...],
                           wv_xi_ref, wv_y_ref, bv_ref,
                           w2_xi_ref, w2_w_ref, w2_y_ref, b2_ref,
                           nonlinearity=nonlinearity, nu=nu)
    u_ref[...] = u.astype(u_ref.dtype)
    xi_out_ref[...] = xi_new.astype(xi_out_ref.dtype)


def _scan_kernel(xi0_ref, y_ref, wv_xi_ref, wv_y_ref, bv_ref,
                 w2_xi_ref, w2_w_ref, w2_y_ref, b2_ref,
                 u_ref, xi_out_ref, xi_carry, *, nonlinearity, nu):
    """Time loop inside the kernel: grid=(batch_tiles, T), T axis 'arbitrary'."""
    @pl.when(pl.program_id(1) == 0)
    def _():
        xi_carry[...] = xi0_ref[...].astype(jnp.float32)

    u, xi_new = _cell_math(xi_carry[...], y_ref[0],
                           wv_xi_ref, wv_y_ref, bv_ref,
                           w2_xi_ref, w2_w_ref, w2_y_ref, b2_ref,
                           nonlinearity=nonlinearity, nu=nu)
    u_ref[0] = u.astype(u_ref.dtype)
    xi_out_ref[0] = xi_new.astype(xi_out_ref.dtype)
    xi_carry[...] = xi_new          # stays in VMEM; never round-trips HBM per step


# --------------------------------------------------------------------------- #
# One-time parameter prep (transposes / head fusion / bias packing)
# --------------------------------------------------------------------------- #
def prepare_params(params, weights_dtype=jnp.float32):
    """One-time prep.  NOTE: weights_dtype=bf16 trades accuracy for bandwidth
    (f32 accumulation only); keep f32 when comparing against an f32 reference."""
    nx = params["W_xi_w"].shape[0]            # (nx, nx+nh+ny)
    nu = params["W_u_w"].shape[0]
    nh = params["W_v_w"].shape[0]
    ny = params["W_v_w"].shape[1] - nx

    wv_t = params["W_v_w"].T                                  # (nx+ny, nh)
    wv_xi = wv_t[:nx].astype(weights_dtype)                   # (nx, nh)
    wv_y = wv_t[nx:].astype(weights_dtype)                    # (ny, nh)
    bv = params["W_v_b"].reshape(1, nh).astype(jnp.float32)

    # Fused second-stage head columns [u | xi'], rows in original order [xi|w|y].
    w_out = jnp.concatenate([params["W_u_w"].T, params["W_xi_w"].T], axis=1)
    w2_xi = w_out[:nx].astype(weights_dtype)                  # (nx, nu+nx)
    w2_w = w_out[nx:nx + nh].astype(weights_dtype)            # (nh, nu+nx)
    w2_y = w_out[nx + nh:].astype(weights_dtype)              # (ny, nu+nx)
    b2 = jnp.concatenate([params["W_u_b"], params["W_xi_b"]]
                         ).reshape(1, nu + nx).astype(jnp.float32)

    # log_std is input-independent; keep it out of the kernel entirely.
    log_std_row = params["log_std_w"][:, 0].reshape(1, nu).astype(jnp.float32)

    return {"wv_xi": wv_xi, "wv_y": wv_y, "bv": bv,
            "w2_xi": w2_xi, "w2_w": w2_w, "w2_y": w2_y, "b2": b2,
            "log_std_row": log_std_row, "dims": (ny, nh, nx, nu)}


def _pick_batch_tile(b_pad, batch_tile, sub):
    tb = _round_up(min(b_pad, batch_tile), sub)
    # v7x has 2 TensorCores: make sure the "parallel" batch axis gives >= 2 grid
    # steps whenever b_pad allows, so megacore sharding can engage.
    if b_pad > sub:
        tb = min(tb, _round_up(pl.cdiv(b_pad, 2), sub))
    return tb


# --------------------------------------------------------------------------- #
# Wrappers
# --------------------------------------------------------------------------- #
def robust_rnn_cell_forward(y, xi=None, prepared=None, *, nonlinearity="tanh",
                            batch_tile=1024, activation_dtype=jnp.float32):
    """One RobustRNNCell step.  Returns (u, xi_, log_std)."""
    ny, nh, nx, nu = prepared["dims"]
    squeeze = (y.ndim == 1)
    if squeeze:
        y = y[None, :]
        if xi is not None and xi.ndim == 1:
            xi = xi[None, :]
    B = y.shape[0]
    if xi is None:                          # matches the PyTorch default
        xi = jnp.zeros((B, nx), y.dtype)

    sub = 16 if jnp.dtype(activation_dtype) == jnp.dtype(jnp.bfloat16) else 8
    b_pad = _round_up(max(B, 1), sub)
    tb = _pick_batch_tile(b_pad, batch_tile, sub)
    grid = (pl.cdiv(b_pad, tb),)

    xi_a = xi.astype(activation_dtype)
    y_a = y.astype(activation_dtype)
    if b_pad != B:
        xi_a = jnp.pad(xi_a, ((0, b_pad - B), (0, 0)))
        y_a = jnp.pad(y_a, ((0, b_pad - B), (0, 0)))

    const = lambda shape: pl.BlockSpec(shape, lambda i: (0, 0))   # resident weights
    kernel = functools.partial(_cell_kernel, nonlinearity=nonlinearity, nu=nu)

    u, xi_ = pl.pallas_call(
        kernel,
        out_shape=(jax.ShapeDtypeStruct((b_pad, nu), activation_dtype),
                   jax.ShapeDtypeStruct((b_pad, nx), activation_dtype)),
        grid=grid,
        in_specs=[
            pl.BlockSpec((tb, nx), lambda i: (i, 0)),          # xi  (tiled)
            pl.BlockSpec((tb, ny), lambda i: (i, 0)),          # y   (tiled)
            const(prepared["wv_xi"].shape), const(prepared["wv_y"].shape),
            const(prepared["bv"].shape),
            const(prepared["w2_xi"].shape), const(prepared["w2_w"].shape),
            const(prepared["w2_y"].shape), const(prepared["b2"].shape),
        ],
        out_specs=(pl.BlockSpec((tb, nu), lambda i: (i, 0)),
                   pl.BlockSpec((tb, nx), lambda i: (i, 0))),
        compiler_params=pltpu.CompilerParams(dimension_semantics=("parallel",)),
    )(xi_a, y_a, prepared["wv_xi"], prepared["wv_y"], prepared["bv"],
      prepared["w2_xi"], prepared["w2_w"], prepared["w2_y"], prepared["b2"])

    if b_pad != B:
        u, xi_ = u[:B], xi_[:B]
    # log_std == ones((B,1)) @ log_std_w.T -> plain broadcast of the stored row.
    log_std = jnp.broadcast_to(prepared["log_std_row"], (B, nu)).astype(activation_dtype)
    if squeeze:
        u, xi_, log_std = u[0], xi_[0], log_std[0]
    return u, xi_, log_std


def robust_rnn_scan_forward(ys, xi0=None, prepared=None, *, nonlinearity="tanh",
                            batch_tile=1024, activation_dtype=jnp.float32):
    """Step the cell over a (T, B, ny) sequence in ONE pallas_call.

    The time axis is an in-kernel grid axis ("arbitrary"); xi is carried in VMEM
    scratch across steps and the weights stay resident, eliminating per-step
    launch overhead and HBM round trips of the state.
    """
    ny, nh, nx, nu = prepared["dims"]
    T, B = ys.shape[0], ys.shape[1]
    if xi0 is None:
        xi0 = jnp.zeros((B, nx), ys.dtype)

    sub = 16 if jnp.dtype(activation_dtype) == jnp.dtype(jnp.bfloat16) else 8
    b_pad = _round_up(max(B, 1), sub)
    tb = _pick_batch_tile(b_pad, batch_tile, sub)
    nb = pl.cdiv(b_pad, tb)

    ys_a = ys.astype(activation_dtype)
    xi0_a = xi0.astype(activation_dtype)
    if b_pad != B:
        ys_a = jnp.pad(ys_a, ((0, 0), (0, b_pad - B), (0, 0)))
        xi0_a = jnp.pad(xi0_a, ((0, b_pad - B), (0, 0)))

    const = lambda shape: pl.BlockSpec(shape, lambda i, t: (0, 0))
    kernel = functools.partial(_scan_kernel, nonlinearity=nonlinearity, nu=nu)

    us, xis = pl.pallas_call(
        kernel,
        out_shape=(jax.ShapeDtypeStruct((T, b_pad, nu), activation_dtype),
                   jax.ShapeDtypeStruct((T, b_pad, nx), activation_dtype)),
        grid=(nb, T),                                # batch outer, time inner
        in_specs=[
            pl.BlockSpec((tb, nx), lambda i, t: (i, 0)),       # xi0
            pl.BlockSpec((1, tb, ny), lambda i, t: (t, i, 0)),  # y_t
            const(prepared["wv_xi"].shape), const(prepared["wv_y"].shape),
            const(prepared["bv"].shape),
            const(prepared["w2_xi"].shape), const(prepared["w2_w"].shape),
            const(prepared["w2_y"].shape), const(prepared["b2"].shape),
        ],
        out_specs=(pl.BlockSpec((1, tb, nu), lambda i, t: (t, i, 0)),
                   pl.BlockSpec((1, tb, nx), lambda i, t: (t, i, 0))),
        scratch_shapes=[pltpu.VMEM((tb, nx), jnp.float32)],     # xi carry
        compiler_params=pltpu.CompilerParams(
            dimension_semantics=("parallel", "arbitrary")),
    )(xi0_a, ys_a, prepared["wv_xi"], prepared["wv_y"], prepared["bv"],
      prepared["w2_xi"], prepared["w2_w"], prepared["w2_y"], prepared["b2"])

    if b_pad != B:
        us, xis = us[:, :B], xis[:, :B]
    log_std = jnp.broadcast_to(prepared["log_std_row"], (B, nu)).astype(activation_dtype)
    return us, xis, log_std


# --------------------------------------------------------------------------- #
# Init + pure-JAX references
# --------------------------------------------------------------------------- #
def init_params(key, input_size, hidden_size, state_size, output_size):
    """Deterministic parameter init mimicking torch.nn.Linear default init."""
    ny, nh, nx, nu = input_size, hidden_size, state_size, output_size
    keys = jax.random.split(key, 6)

    def linear_init(kw, kb, out_dim, in_dim):
        bound = 1.0 / np.sqrt(in_dim)
        w = jax.random.uniform(kw, (out_dim, in_dim), jnp.float32, -bound, bound)
        b = jax.random.uniform(kb, (out_dim,), jnp.float32, -bound, bound)
        return w, b

    w_xi, b_xi = linear_init(keys[0], keys[1], nx, nx + nh + ny)
    w_u, b_u = linear_init(keys[2], keys[3], nu, nx + nh + ny)
    w_v, b_v = linear_init(keys[4], keys[5], nh, nx + ny)
    log_std_w = jnp.full((nu, 1), np.log(0.2), dtype=jnp.float32)

    return {"W_xi_w": w_xi, "W_xi_b": b_xi,
            "W_u_w": w_u, "W_u_b": b_u,
            "W_v_w": w_v, "W_v_b": b_v,
            "log_std_w": log_std_w}


def _reference_forward(y, xi, params, nonlinearity="tanh"):
    act = {"tanh": jnp.tanh, "relu": lambda v: jnp.maximum(v, 0.0)}.get(
        nonlinearity, lambda v: v)
    xi_y = jnp.concatenate([xi, y], axis=-1)
    v = xi_y @ params["W_v_w"].T + params["W_v_b"]
    w = act(v)
    xi_w_y = jnp.concatenate([xi, w, y], axis=-1)
    u = xi_w_y @ params["W_u_w"].T + params["W_u_b"]
    xi_ = xi_w_y @ params["W_xi_w"].T + params["W_xi_b"]
    log_std = jnp.ones((y.shape[0], 1)) @ params["log_std_w"].T
    return u, xi_, log_std


def _reference_scan(ys, xi0, params, nonlinearity="tanh"):
    def step(xi, y):
        u, xi_, _ = _reference_forward(y, xi, params, nonlinearity)
        return xi_, (u, xi_)
    _, (us, xis) = lax.scan(step, xi0, ys)
    return us, xis


# --------------------------------------------------------------------------- #
if __name__ == "__main__":
    B, ny, nh, nx, nu, T = 2, 16, 32, 32, 8, 8

    key = jax.random.PRNGKey(0)
    k_params, k_y, k_seq = jax.random.split(key, 3)

    params = init_params(k_params, ny, nh, nx, nu)
    prepared = prepare_params(params)        # one-time prep, hoisted out of the call

    # ---- single step (matches the module forward; xi defaults to zeros) ----
    y = jax.random.normal(k_y, (B, ny), jnp.float32)
    u, xi_, log_std = robust_rnn_cell_forward(y, None, prepared, nonlinearity="tanh")
    jax.block_until_ready((u, xi_, log_std))

    xi0 = jnp.zeros((B, nx), jnp.float32)
    u_ref, xi_ref, ls_ref = _reference_forward(y, xi0, params, "tanh")
    assert u.shape == (B, nu) and xi_.shape == (B, nx) and log_std.shape == (B, nu)
    np.testing.assert_allclose(np.asarray(u), np.asarray(u_ref), rtol=1e-5, atol=1e-5)
    np.testing.assert_allclose(np.asarray(xi_), np.asarray(xi_ref), rtol=1e-5, atol=1e-5)
    np.testing.assert_allclose(np.asarray(log_std), np.asarray(ls_ref), rtol=1e-5, atol=1e-5)

    # ---- in-kernel time loop: xi carried in VMEM across T steps ------------
    ys = jax.random.normal(k_seq, (T, B, ny), jnp.float32)
    us, xis, _ = robust_rnn_scan_forward(ys, xi0, prepared, nonlinearity="tanh")
    jax.block_until_ready((us, xis))
    us_ref, xis_ref = _reference_scan(ys, xi0, params, "tanh")
    np.testing.assert_allclose(np.asarray(us), np.asarray(us_ref), rtol=1e-4, atol=1e-4)
    np.testing.assert_allclose(np.asarray(xis), np.asarray(xis_ref), rtol=1e-4, atol=1e-4)

    print("KERNEL_OK")
</pallas_src>

<mosaic_0001>
module attributes {stable_mosaic.version = 11 : i64} {
  func.func @_cell_kernel(%arg0: i32, %arg1: memref<8x32xf32, #tpu.memory_space<vmem>>, %arg2: memref<8x16xf32, #tpu.memory_space<vmem>>, %arg3: memref<32x32xf32, #tpu.memory_space<vmem>>, %arg4: memref<16x32xf32, #tpu.memory_space<vmem>>, %arg5: memref<1x32xf32, #tpu.memory_space<vmem>>, %arg6: memref<32x40xf32, #tpu.memory_space<vmem>>, %arg7: memref<32x40xf32, #tpu.memory_space<vmem>>, %arg8: memref<16x40xf32, #tpu.memory_space<vmem>>, %arg9: memref<1x40xf32, #tpu.memory_space<vmem>>, %arg10: memref<8x8xf32, #tpu.memory_space<vmem>>, %arg11: memref<8x32xf32, #tpu.memory_space<vmem>>) attributes {dimension_semantics = [#tpu.dimension_semantics<parallel>], iteration_bounds = array<i64: 1>, scalar_prefetch = 0 : i64, scratch_operands = 0 : i64, tpu.core_type = #tpu.core_type<tc>, window_params = [{transform_indices = @transform_0, window_bounds = array<i64: 8, 32>}, {transform_indices = @transform_1, window_bounds = array<i64: 8, 16>}, {pipeline_mode = #tpu.pipeline_mode<synchronous>, transform_indices = @transform_2, window_bounds = array<i64: 32, 32>}, {pipeline_mode = #tpu.pipeline_mode<synchronous>, transform_indices = @transform_3, window_bounds = array<i64: 16, 32>}, {pipeline_mode = #tpu.pipeline_mode<synchronous>, transform_indices = @transform_4, window_bounds = array<i64: 1, 32>}, {pipeline_mode = #tpu.pipeline_mode<synchronous>, transform_indices = @transform_5, window_bounds = array<i64: 32, 40>}, {pipeline_mode = #tpu.pipeline_mode<synchronous>, transform_indices = @transform_6, window_bounds = array<i64: 32, 40>}, {pipeline_mode = #tpu.pipeline_mode<synchronous>, transform_indices = @transform_7, window_bounds = array<i64: 16, 40>}, {pipeline_mode = #tpu.pipeline_mode<synchronous>, transform_indices = @transform_8, window_bounds = array<i64: 1, 40>}, {transform_indices = @transform_9, window_bounds = array<i64: 8, 8>}, {transform_indices = @transform_10, window_bounds = array<i64: 8, 32>}]} {
    %c0 = arith.constant 0 : index
    %c0_0 = arith.constant 0 : index
    %0 = vector.load %arg1[%c0, %c0_0] : memref<8x32xf32, #tpu.memory_space<vmem>>, vector<8x32xf32>
    %c0_1 = arith.constant 0 : index
    %c0_2 = arith.constant 0 : index
    %1 = vector.load %arg2[%c0_1, %c0_2] : memref<8x16xf32, #tpu.memory_space<vmem>>, vector<8x16xf32>
    %c0_3 = arith.constant 0 : index
    %c0_4 = arith.constant 0 : index
    %2 = vector.load %arg3[%c0_3, %c0_4] : memref<32x32xf32, #tpu.memory_space<vmem>>, vector<32x32xf32>
    %cst = arith.constant dense<0.000000e+00> : vector<8x32xf32>
    %3 = tpu.matmul %0, %2, %cst {dimension_numbers = #tpu.dot_dimension_numbers<[1], [0], [0], [1], [0, 0, 1, 1], [], []>} : vector<8x32xf32>, vector<32x32xf32>, vector<8x32xf32> -> vector<8x32xf32>
    %c0_5 = arith.constant 0 : index
    %c0_6 = arith.constant 0 : index
    %4 = vector.load %arg4[%c0_5, %c0_6] : memref<16x32xf32, #tpu.memory_space<vmem>>, vector<16x32xf32>
    %cst_7 = arith.constant dense<0.000000e+00> : vector<8x32xf32>
    %5 = tpu.matmul %1, %4, %cst_7 {dimension_numbers = #tpu.dot_dimension_numbers<[1], [0], [0], [1], [0, 0, 1, 1], [], []>} : vector<8x16xf32>, vector<16x32xf32>, vector<8x32xf32> -> vector<8x32xf32>
    %6 = arith.addf %3, %5 : vector<8x32xf32>
    %c0_8 = arith.constant 0 : index
    %c0_9 = arith.constant 0 : index
    %7 = vector.load %arg5[%c0_8, %c0_9] : memref<1x32xf32, #tpu.memory_space<vmem>>, vector<1x32xf32>
    %8 = vector.broadcast %7 : vector<1x32xf32> to vector<8x32xf32>
    %9 = arith.addf %6, %8 : vector<8x32xf32>
    %10 = math.tanh %9 : vector<8x32xf32>
    %c0_10 = arith.constant 0 : index
    %c0_11 = arith.constant 0 : index
    %11 = vector.load %arg6[%c0_10, %c0_11] : memref<32x40xf32, #tpu.memory_space<vmem>>, vector<32x40xf32>
    %cst_12 = arith.constant dense<0.000000e+00> : vector<8x40xf32>
    %12 = tpu.matmul %0, %11, %cst_12 {dimension_numbers = #tpu.dot_dimension_numbers<[1], [0], [0], [1], [0, 0, 1, 1], [], []>} : vector<8x32xf32>, vector<32x40xf32>, vector<8x40xf32> -> vector<8x40xf32>
    %c0_13 = arith.constant 0 : index
    %c0_14 = arith.constant 0 : index
    %13 = vector.load %arg7[%c0_13, %c0_14] : memref<32x40xf32, #tpu.memory_space<vmem>>, vector<32x40xf32>
    %cst_15 = arith.constant dense<0.000000e+00> : vector<8x40xf32>
    %14 = tpu.matmul %10, %13, %cst_15 {dimension_numbers = #tpu.dot_dimension_numbers<[1], [0], [0], [1], [0, 0, 1, 1], [], []>} : vector<8x32xf32>, vector<32x40xf32>, vector<8x40xf32> -> vector<8x40xf32>
    %15 = arith.addf %12, %14 : vector<8x40xf32>
    %c0_16 = arith.constant 0 : index
    %c0_17 = arith.constant 0 : index
    %16 = vector.load %arg8[%c0_16, %c0_17] : memref<16x40xf32, #tpu.memory_space<vmem>>, vector<16x40xf32>
    %cst_18 = arith.constant dense<0.000000e+00> : vector<8x40xf32>
    %17 = tpu.matmul %1, %16, %cst_18 {dimension_numbers = #tpu.dot_dimension_numbers<[1], [0], [0], [1], [0, 0, 1, 1], [], []>} : vector<8x16xf32>, vector<16x40xf32>, vector<8x40xf32> -> vector<8x40xf32>
    %18 = arith.addf %15, %17 : vector<8x40xf32>
    %c0_19 = arith.constant 0 : index
    %c0_20 = arith.constant 0 : index
    %19 = vector.load %arg9[%c0_19, %c0_20] : memref<1x40xf32, #tpu.memory_space<vmem>>, vector<1x40xf32>
    %20 = vector.broadcast %19 : vector<1x40xf32> to vector<8x40xf32>
    %21 = arith.addf %18, %20 : vector<8x40xf32>
    %22 = vector.extract_strided_slice %21 {offsets = [0, 0], sizes = [8, 8], strides = [1, 1]} : vector<8x40xf32> to vector<8x8xf32>
    %23 = vector.extract_strided_slice %21 {offsets = [0, 8], sizes = [8, 32], strides = [1, 1]} : vector<8x40xf32> to vector<8x32xf32>
    %c0_21 = arith.constant 0 : index
    %c0_22 = arith.constant 0 : index
    %24 = vector.load %arg10[%c0_21, %c0_22] : memref<8x8xf32, #tpu.memory_space<vmem>>, vector<8x8xf32>
    tpu.vector_store %arg10[%c0_21, %c0_22], %22 {strides = array<i32>} : memref<8x8xf32, #tpu.memory_space<vmem>>, vector<8x8xf32>,
    %c0_23 = arith.constant 0 : index
    %c0_24 = arith.constant 0 : index
    %25 = vector.load %arg11[%c0_23, %c0_24] : memref<8x32xf32, #tpu.memory_space<vmem>>, vector<8x32xf32>
    tpu.vector_store %arg11[%c0_23, %c0_24], %23 {strides = array<i32>} : memref<8x32xf32, #tpu.memory_space<vmem>>, vector<8x32xf32>,
    return
  }
  func.func @transform_0(%arg0: i32) -> (i32, i32) {
    %c0_i32 = arith.constant 0 : i32
    %c0_i32_0 = arith.constant 0 : i32
    return %arg0, %c0_i32 : i32, i32
  }
  func.func @transform_1(%arg0: i32) -> (i32, i32) {
    %c0_i32 = arith.constant 0 : i32
    %c0_i32_0 = arith.constant 0 : i32
    return %arg0, %c0_i32 : i32, i32
  }
  func.func @transform_2(%arg0: i32) -> (i32, i32) {
    %c0_i32 = arith.constant 0 : i32
    %c0_i32_0 = arith.constant 0 : i32
    %c0_i32_1 = arith.constant 0 : i32
    return %c0_i32, %c0_i32_0 : i32, i32
  }
  func.func @transform_3(%arg0: i32) -> (i32, i32) {
    %c0_i32 = arith.constant 0 : i32
    %c0_i32_0 = arith.constant 0 : i32
    %c0_i32_1 = arith.constant 0 : i32
    return %c0_i32, %c0_i32_0 : i32, i32
  }
  func.func @transform_4(%arg0: i32) -> (i32, i32) {
    %c0_i32 = arith.constant 0 : i32
    %c0_i32_0 = arith.constant 0 : i32
    %c0_i32_1 = arith.constant 0 : i32
    return %c0_i32, %c0_i32_0 : i32, i32
  }
  func.func @transform_5(%arg0: i32) -> (i32, i32) {
    %c0_i32 = arith.constant 0 : i32
    %c0_i32_0 = arith.constant 0 : i32
    %c0_i32_1 = arith.constant 0 : i32
    return %c0_i32, %c0_i32_0 : i32, i32
  }
  func.func @transform_6(%arg0: i32) -> (i32, i32) {
    %c0_i32 = arith.constant 0 : i32
    %c0_i32_0 = arith.constant 0 : i32
    %c0_i32_1 = arith.constant 0 : i32
    return %c0_i32, %c0_i32_0 : i32, i32
  }
  func.func @transform_7(%arg0: i32) -> (i32, i32) {
    %c0_i32 = arith.constant 0 : i32
    %c0_i32_0 = arith.constant 0 : i32
    %c0_i32_1 = arith.constant 0 : i32
    return %c0_i32, %c0_i32_0 : i32, i32
  }
  func.func @transform_8(%arg0: i32) -> (i32, i32) {
    %c0_i32 = arith.constant 0 : i32
    %c0_i32_0 = arith.constant 0 : i32
    %c0_i32_1 = arith.constant 0 : i32
    return %c0_i32, %c0_i32_0 : i32, i32
  }
  func.func @transform_9(%arg0: i32) -> (i32, i32) {
    %c0_i32 = arith.constant 0 : i32
    %c0_i32_0 = arith.constant 0 : i32
    return %arg0, %c0_i32 : i32, i32
  }
  func.func @transform_10(%arg0: i32) -> (i32, i32) {
    %c0_i32 = arith.constant 0 : i32
    %c0_i32_0 = arith.constant 0 : i32
    return %arg0, %c0_i32 : i32, i32
  }
}

</mosaic_0001>

<bundles_post_ra>
// kernel: tpu_custom_call.1
= control target key start
LH: loop header
LB: loop body
LE: loop exit
PB: predicated region body
PF: predicated region fallthrough
CT: control target
= control target key end

     0   :  { %16 = vsyncpa [#allocation3], 0  ;;  %s1053_s0 = inlined_call_operand.hbm [shape: f32[8,32], index: 0, kind: input, shape index: {}]   ;;  %s1054_s1 = inlined_call_operand.hbm [shape: f32[8,16], index: 1, kind: input, shape index: {}]   ;;  %s1055_s2 = inlined_call_operand.hbm [shape: f32[32,32], index: 2, kind: input, shape index: {}]   ;;  %s1056_s3 = inlined_call_operand.hbm [shape: f32[16,32], index: 3, kind: input, shape index: {}]   ;;  %s1057_s4 = inlined_call_operand.vmem [shape: f32[1,32], index: 4, kind: input, shape index: {}]   ;;  %s1058_s5 = inlined_call_operand.hbm [shape: f32[32,40], index: 5, kind: input, shape index: {}]   ;;  %s1059_s6 = inlined_call_operand.hbm [shape: f32[32,40], index: 6, kind: input, shape index: {}]   ;;  %s1060_s7 = inlined_call_operand.vmem [shape: f32[16,40], index: 7, kind: input, shape index: {}]   ;;  %s1061_s8 = inlined_call_operand.vmem [shape: f32[1,40], index: 8, kind: input, shape index: {}]   ;;  %s1062_s9 = inlined_call_operand.hbm [shape: f32[8,8], index: 9, kind: output, shape index: {0}]   ;;  %s1063_s10 = inlined_call_operand.hbm [shape: f32[8,32], index: 10, kind: output, shape index: {1}]  }
   0x1   :  { %17 = vsyncpa [#allocation6], 0 }
   0x2   :  { %18 = vsyncpa [#allocation9], 0 }
   0x3   :  { %19 = vsyncpa [#allocation12], 0 }
   0x4   :  { %20 = vsyncpa [#allocation4], 0 }
   0x5   :  { %21 = vsyncpa [#allocation15], 0  ;;  %s853_s13 = smov [#allocation5]   ;;  %s665_s17 = scalar_lea.hbm %s1054_s1, 128 }
   0x6   :  { %s38_s14 = sshll.u32 %s853_s13, 4  ;;  %p666_p0 = scmp.ne.s32.totalorder %s1054_s1, %s665_s17  ;;  %s39_s14 = int_to_ptr.vmem [resolvable:$true] %s38_s14 }
   0x7   :  { %p669_p1 = scmp.lt.u32.totalorder %s665_s17, %s1054_s1 }
   0x9   :  { %p671_p2 = pnand %p669_p1, %p666_p0 }
   0xb   :  { %674 = shalt.err (!%p671_p2)
}
   0xc   :  { %s675_s22 = scalar_lea.vmem %s39_s14, 128  ;;  %p680_p4 = scmp.lt.s32.totalorder %s39_s14, %s39_s14 }
   0xd   :  { %p676_p3 = scmp.ne.s32.totalorder %s39_s14, %s675_s22  ;;  %p681_p5 = scmp.lt.s32.totalorder %s675_s22, %s675_s22 }
   0xf   :  { %p682_p6 = por %p681_p5, %p680_p4 }
  0x11   :  { %p683_p7 = pnand %p682_p6, %p676_p3 }
  0x13   :  { %686 = shalt.err (!%p683_p7)
}
  0x14   :  { %41 = dma.hbm_to_vmem [thread:$0]  %s1054_s1, 128, %s39_s14, [#allocation6]  }
  0x15   :  { %s854_s25 = smov [#allocation8]   ;;  %s855_s27 = smov [#allocation2]  }
  0x16   :  { %s59_s26 = sshll.u32 %s854_s25, 4  ;;  %s28_s28 = sshll.u32 %s855_s27, 4  ;;  %s60_s26 = int_to_ptr.vmem [resolvable:$true] %s59_s26  ;;  %s29_s28 = int_to_ptr.vmem [resolvable:$true] %s28_s28 }
  0x17   :  { %s687_s11 = scalar_lea.hbm %s1056_s3, 256 }
  0x18   :  { %p688_p8 = scmp.ne.s32.totalorder %s1056_s3, %s687_s11  ;;  %p691_p9 = scmp.lt.u32.totalorder %s687_s11, %s1056_s3 }
  0x1a   :  { %p693_p10 = pnand %p691_p9, %p688_p8 }
  0x1c   :  { %696 = shalt.err (!%p693_p10)
}
  0x1d   :  { %s697_s1 = scalar_lea.vmem %s60_s26, 256  ;;  %p702_p12 = scmp.lt.s32.totalorder %s60_s26, %s60_s26 }
  0x1e   :  { %p698_p11 = scmp.ne.s32.totalorder %s60_s26, %s697_s1  ;;  %p703_p13 = scmp.lt.s32.totalorder %s697_s1, %s697_s1 }
  0x20   :  { %p704_p0 = por %p703_p13, %p702_p12 }
  0x22   :  { %p705_p1 = pnand %p704_p0, %p698_p11 }
  0x24   :  { %708 = shalt.err (!%p705_p1)
}
  0x25   :  { %s856_s14 = smov 128   ;;  %s857_s17 = smov 8  }
  0x26   :  { %65 = dma.hbm_to_vmem [thread:$0]  %s1056_s3, 256, %s60_s26, [#allocation9], %s856_s14, %s856_s14, %s857_s17  }
  0x27   :  { %s709_s22 = scalar_lea.hbm %s1053_s0, 128 }
  0x28   :  { %p710_p2 = scmp.ne.s32.totalorder %s1053_s0, %s709_s22  ;;  %p713_p3 = scmp.lt.u32.totalorder %s709_s22, %s1053_s0 }
  0x2a   :  { %p715_p4 = pnand %p713_p3, %p710_p2 }
  0x2c   :  { %718 = shalt.err (!%p715_p4)
}
  0x2d   :  { %s719_s29 = scalar_lea.vmem %s29_s28, 128  ;;  %p724_p6 = scmp.lt.s32.totalorder %s29_s28, %s29_s28 }
  0x2e   :  { %p720_p5 = scmp.ne.s32.totalorder %s29_s28, %s719_s29  ;;  %p725_p7 = scmp.lt.s32.totalorder %s719_s29, %s719_s29 }
  0x30   :  { %p726_p8 = por %p725_p7, %p724_p6 }
  0x32   :  { %p727_p9 = pnand %p726_p8, %p720_p5 }
  0x34   :  { %730 = shalt.err (!%p727_p9)
}
  0x35   :  { %31 = dma.hbm_to_vmem [thread:$0]  %s1053_s0, 128, %s29_s28, [#allocation3]  }
  0x36   :  { %s858_s30 = smov [#allocation7]   ;;  %s859_s12 = smov [#allocation10]  }
  0x37   :  { %s47_s11 = sshll.u32 %s858_s30, 4  ;;  %s73_s13 = sshll.u32 %s859_s12, 4  ;;  %s48_s11 = int_to_ptr.vmem [resolvable:$true] %s47_s11  ;;  %s74_s13 = int_to_ptr.vmem [resolvable:$true] %s73_s13 }
  0x38   :  { %s731_s1 = scalar_lea.hbm %s1055_s2, 512 }
  0x39   :  { %p732_p10 = scmp.ne.s32.totalorder %s1055_s2, %s731_s1  ;;  %p735_p11 = scmp.lt.u32.totalorder %s731_s1, %s1055_s2 }
  0x3b   :  { %p737_p12 = pnand %p735_p11, %p732_p10 }
  0x3d   :  { %740 = shalt.err (!%p737_p12)
}
  0x3e   :  { %s741_s0 = scalar_lea.vmem %s48_s11, 512  ;;  %p746_p0 = scmp.lt.s32.totalorder %s48_s11, %s48_s11 }
  0x3f   :  { %p742_p13 = scmp.ne.s32.totalorder %s48_s11, %s741_s0  ;;  %p747_p1 = scmp.lt.s32.totalorder %s741_s0, %s741_s0 }
  0x41   :  { %p748_p2 = por %p747_p1, %p746_p0 }
  0x43   :  { %p749_p3 = pnand %p748_p2, %p742_p13 }
  0x45   :  { %752 = shalt.err (!%p749_p3)
}
  0x46   :  { %53 = dma.hbm_to_vmem [thread:$0]  %s1055_s2, 512, %s48_s11, [#allocation6], %s856_s14, %s856_s14, %s857_s17  }
  0x47   :  { %s753_s25 = scalar_lea.hbm %s1058_s5, 512 }
  0x48   :  { %p754_p4 = scmp.ne.s32.totalorder %s1058_s5, %s753_s25  ;;  %p757_p5 = scmp.lt.u32.totalorder %s753_s25, %s1058_s5 }
  0x4a   :  { %p759_p6 = pnand %p757_p5, %p754_p4 }
  0x4c   :  { %762 = shalt.err (!%p759_p6)
}
  0x4d   :  { %s763_s30 = scalar_lea.vmem %s74_s13, 512  ;;  %p768_p8 = scmp.lt.s32.totalorder %s74_s13, %s74_s13 }
  0x4e   :  { %p764_p7 = scmp.ne.s32.totalorder %s74_s13, %s763_s30  ;;  %p769_p9 = scmp.lt.s32.totalorder %s763_s30, %s763_s30 }
  0x50   :  { %p770_p10 = por %p769_p9, %p768_p8 }
  0x52   :  { %p771_p11 = pnand %p770_p10, %p764_p7 }
  0x54   :  { %774 = shalt.err (!%p771_p11)
}
  0x55   :  { %79 = dma.hbm_to_vmem [thread:$0]  %s1058_s5, 512, %s74_s13, [#allocation9], %s856_s14, %s856_s14, %s857_s17  }
  0x56   :  { %s860_s12 = smov [#allocation11]   ;;  %s775_s18 = scalar_lea.hbm %s1059_s6, 512 }
  0x57   :  { %s85_s15 = sshll.u32 %s860_s12, 4  ;;  %p776_p12 = scmp.ne.s32.totalorder %s1059_s6, %s775_s18  ;;  %s86_s15 = int_to_ptr.vmem [resolvable:$true] %s85_s15 }
  0x58   :  { %p779_p13 = scmp.lt.u32.totalorder %s775_s18, %s1059_s6 }
  0x5a   :  { %p781_p0 = pnand %p779_p13, %p776_p12 }
  0x5c   :  { %784 = shalt.err (!%p781_p0)
}
  0x5d   :  { %s785_s28 = scalar_lea.vmem %s86_s15, 512  ;;  %p790_p2 = scmp.lt.s32.totalorder %s86_s15, %s86_s15 }
  0x5e   :  { %p786_p1 = scmp.ne.s32.totalorder %s86_s15, %s785_s28  ;;  %p791_p3 = scmp.lt.s32.totalorder %s785_s28, %s785_s28 }
  0x60   :  { %p792_p4 = por %p791_p3, %p790_p2 }
  0x62   :  { %p793_p5 = pnand %p792_p4, %p786_p1 }
  0x64   :  { %796 = shalt.err (!%p793_p5)
}
  0x65   :  { %91 = dma.hbm_to_vmem [thread:$0]  %s1059_s6, 512, %s86_s15, [#allocation12], %s856_s14, %s856_s14, %s857_s17  }
  0x66   :  { %841 = dma.done.wait [#allocation3], 128  }
  0x67   :  { %842 = vsyncadd [#allocation3], 4294967168 }
  0x68   :  { %843 = dma.done.wait [#allocation6], 640  }
  0x69   :  { %844 = vsyncadd [#allocation6], 4294966656 }
  0x6a   :  { %845 = dma.done.wait [#allocation9], 768  }
  0x6b   :  { %846 = vsyncadd [#allocation9], 4294966528 }
  0x6c   :  { %847 = dma.done.wait [#allocation12], 512  }
  0x6d   :  { %848 = vsyncadd [#allocation12], 4294966784  ;;  %v861_v0 = vmov 0.0|0.0   ;;  %vm862_vm0 = vmmov 0   ;;  %v863_v1 = vmov 0.0   ;;  %v116_v2 = vld [vmem:[#allocation7] sm:$0xff] }
  0x6e   :  { %628 = vmatprep.subr.bf16.mxu1 %v861_v0  ;;  %625 = vmatprep.subr.bf16.mxu0 %v861_v0  ;;  %v117_v3 = vld [vmem:[#allocation7 + $0x8] sm:$0xff]  ;;  %v120_v4 = vld [vmem:[#allocation8] sm:$0xff]  ;;  %v118_v7 = vld [vmem:[#allocation7 + $0x10] sm:$0xff]  ;;  %vm122_vm1 = vcmask 130048   ;;  %vm196_vm2 = vcmask 261120   ;;  %vm511_vm3 = vcmask 64512  }
  0x6f   :  { %582 = vmatprep.mubr.msk.f32.mxu0 %vm862_vm0, %v863_v1  ;;  %593 = vmatprep.mubr.msk.f32.mxu1 %vm862_vm0, %v863_v1  ;;  %v629_v5 = vpack.c.bf16 %v117_v3, %v116_v2  ;;  %v121_v6 = vld [vmem:[#allocation8 + $0x8] sm:$0xff]  ;;  %v119_v8 = vld [vmem:[#allocation7 + $0x18] sm:$0xff]  ;;  %v114_v12 = vld [vmem:[#allocation2] sm:$0xff]  ;;  %s865_s29 = smov 120  }
  0x70   :  { %v626_v9 = vpack.c.bf16 %v121_v6, %v120_v4  ;;  %v632_v10 = vpack.c.bf16 %v119_v8, %v118_v7  ;;  %v115_v11 = vld [vmem:[#allocation5] sm:$0xff]  ;;  %v283_v13 = vld [vmem:[#allocation11] sm:$0xff]  ;;  %v285_v18 = vld [vmem:[#allocation11 + $0x10] sm:$0xff] }
  0x71   :  { %630 = vmatpush3.bf16.msra.mxu1 %v629_v5  ;;  %v284_v14 = vld [vmem:[#allocation11 + $0x8] sm:$0xff]  ;;  %v279_v15 = vld [vmem:[#allocation10] sm:$0xff]  ;;  %v286_v19 = vld [vmem:[#allocation11 + $0x18] sm:$0xff] }
  0x72   :  { %627 = vmatpush3.bf16.msra.mxu0 %v626_v9  ;;  %631 = vmatprep.subr.bf16.mxu1 %v861_v0  ;;  %v635_v16 = vpack.c.bf16 %v284_v14, %v283_v13  ;;  %v280_v17 = vld [vmem:[#allocation10 + $0x8] sm:$0xff]  ;;  %v281_v21 = vld [vmem:[#allocation10 + $0x10] sm:$0xff]  ;;  %v282_v22 = vld [vmem:[#allocation10 + $0x18] sm:$0xff]  ;;  %v638_v23 = vpack.c.bf16 %v286_v19, %v285_v18 }
  0x73   :  { %634 = vmatprep.subr.bf16.mxu0 %v861_v0  ;;  %v641_v20 = vpack.c.bf16 %v280_v17, %v279_v15  ;;  %v644_v24 = vpack.c.bf16 %v282_v22, %v281_v21  ;;  %v552_v28 = vld [vmem:[%s1057_s4] ss:$0 sm:$0xff]  ;;  %v431_v33 = vld [vmem:[%s1060_s7 + $0x8] sm:$0xff] }
  0x74   :  { %v430_v32 = vld [vmem:[%s1060_s7] sm:$0xff]  ;;  %s864_s7 = smov [#allocation13]  }
  0x75   :  { %633 = vmatpush3.bf16.msra.mxu1 %v632_v10  ;;  %583 = vmatmul.mubr.msk.f32.vlgmr.msra.gmra.mrb[0].mxu0 %vm122_vm1, %v115_v11  ;;  %v647_v34 = vpack.c.bf16 %v431_v33, %v430_v32  ;;  %v556_v42 = vld [vmem:[%s1061_s8] ss:$0 sm:$0xff]  ;;  %s524_s27 = sshll.u32 %s864_s7, 4  ;;  %s525_s27 = int_to_ptr.vmem [resolvable:$true] %s524_s27 }
  0x76   :  { %640 = vmatprep.subr.bf16.mxu1 %v861_v0  ;;  %604 = vmatprep.mubr.msk.f32.mxu0 %vm862_vm0, %v863_v1  ;;  %s797_s3 = scalar_lea.vmem %s525_s27, 128  ;;  %p802_p7 = scmp.lt.s32.totalorder %s525_s27, %s525_s27 }
  0x77   :  { %636 = vmatpush3.bf16.msra.mxu0 %v635_v16  ;;  %p798_p6 = scmp.ne.s32.totalorder %s525_s27, %s797_s3  ;;  %p803_p8 = scmp.lt.s32.totalorder %s797_s3, %s797_s3 }
  0x78   :  { %594 = vmatmul.mubr.msk.f32.vlgmr.msra.gmra.mrb[0].mxu1 %vm196_vm2, %v114_v12  ;;  %637 = vmatprep.subr.bf16.mxu0 %v861_v0 }
  0x79   :  { %615 = vmatprep.mubr.msk.f32.mxu1 %vm862_vm0, %v863_v1  ;;  %642 = vmatpush3.bf16.msra.mxu1 %v641_v20  ;;  %p804_p9 = por %p803_p8, %p802_p7 }
  0x7a   :  { %643 = vmatprep.subr.bf16.mxu1 %v861_v0 }
  0x7b   :  { %639 = vmatpush3.bf16.msra.mxu0 %v638_v23  ;;  %p805_p10 = pnand %p804_p9, %p798_p6 }
  0x7c   :  { %646 = vmatprep.subr.bf16.mxu0 %v861_v0 }
  0x7d   :  { %645 = vmatpush3.bf16.msra.mxu1 %v644_v24 }
  0x80   :  { %616 = vmatmul.mubr.msk.f32.vlgmr.msra.gmra.mrb[2].mxu1 %vm196_vm2, %v114_v12 }
 0x148   :  { %v192_v25 = vpop.f32.mrb[0].mxu0 }
 0x149   :  { %v584_v26 = vpop.f32.mrb[1].mxu0 }
 0x14b   :  { %v266_v27 = vpop.f32.mrb[0].mxu1 }
 0x14c   :  { %v267_v29 = vadd.f32 %v266_v27, %v192_v25  ;;  %v595_v30 = vpop.f32.mrb[1].mxu1 }
 0x14e   :  { %v277_v31 = vadd.f32 %v552_v28, %v267_v29 }
 0x150   :  { %663 = vtanh.f32 %v277_v31 }
 0x153   :  { %v426_v36 = vpop.f32.mrb[2].mxu1 }
 0x154   :  { %v617_v37 = vpop.f32.mrb[3].mxu1 }
 0x15a   :  { %v664_v35 = vpop.eup %663 }
 0x15b   :  { %605 = vmatmul.mubr.msk.f32.vlgmr.msra.gmra.mrb[2].mxu0 %vm196_vm2, %v664_v35 }
 0x15c   :  { %648 = vmatpush3.bf16.msra.mxu0 %v647_v34  ;;  %622 = vmatprep.mubr.msk.f32.mxu0 %vm862_vm0, %v863_v1 }
 0x15f   :  { %623 = vmatmul.mubr.msk.f32.vlgmr.msra.gmra.mrb[4].mxu0 %vm122_vm1, %v115_v11 }
 0x22e   :  { %v356_v38 = vpop.f32.mrb[2].mxu0 }
 0x22f   :  { %v427_v39 = vadd.f32 %v426_v36, %v356_v38  ;;  %v606_v40 = vpop.f32.mrb[3].mxu0 }
 0x232   :  { %v498_v41 = vpop.f32.mrb[4].mxu0 }
 0x233   :  { %v502_v43 = vadd.f32 %v498_v41, %v427_v39  ;;  %v624_v44 = vpop.f32.mrb[5].mxu0 }
 0x235   :  { %v510_v45 = vadd.f32 %v556_v42, %v502_v43 }
 0x237   :  { %514 = vrot.lane.b32.xlu0 %v510_v45, %s865_s29  ;;  %512 = vst.msk [vmem:[#allocation13] sm:$0xff] %vm511_vm3, %v510_v45 }
 0x238   :  { %808 = shalt.err (!%p805_p10)
}
 0x239   :  { %s809_s8 = scalar_lea.hbm %s1062_s9, 128 }
 0x23a   :  { %p810_p11 = scmp.ne.s32.totalorder %s1062_s9, %s809_s8  ;;  %p813_p12 = scmp.lt.u32.totalorder %s809_s8, %s1062_s9 }
 0x23c   :  { %p815_p13 = pnand %p813_p12, %p810_p11 }
 0x23e   :  { %818 = shalt.err (!%p815_p13)
}
 0x23f   :  { %527 = dma.vmem_to_hbm [thread:$0]  %s525_s27, 128, %s1062_s9, [#allocation4]  }
 0x240   :  { %s866_s18 = smov [#allocation14]  }
 0x241   :  { %s534_s19 = sshll.u32 %s866_s18, 4  ;;  %s535_s19 = int_to_ptr.vmem [resolvable:$true] %s534_s19 }
 0x242   :  { %s819_s20 = scalar_lea.vmem %s535_s19, 128  ;;  %p824_p1 = scmp.lt.s32.totalorder %s535_s19, %s535_s19 }
 0x243   :  { %p820_p0 = scmp.ne.s32.totalorder %s535_s19, %s819_s20  ;;  %p825_p2 = scmp.lt.s32.totalorder %s819_s20, %s819_s20 }
 0x245   :  { %p826_p3 = por %p825_p2, %p824_p1 }
 0x247   :  { %p827_p4 = pnand %p826_p3, %p820_p0 }
 0x2a9   :  { %v515_v46 = vpop.permute.xlu0 %514 }
 0x2aa   :  { %517 = vst.msk [vmem:[#allocation14] sm:$0xff] %vm196_vm2, %v515_v46 }
 0x2ab   :  { %830 = shalt.err (!%p827_p4)
}
 0x2ac   :  { %s831_s28 = scalar_lea.hbm %s1063_s10, 128 }
 0x2ad   :  { %p832_p5 = scmp.ne.s32.totalorder %s1063_s10, %s831_s28  ;;  %p835_p6 = scmp.lt.u32.totalorder %s831_s28, %s1063_s10 }
 0x2af   :  { %p837_p7 = pnand %p835_p6, %p832_p5 }
 0x2b1   :  { %840 = shalt.err (!%p837_p7)
}
 0x2b2   :  { %537 = dma.vmem_to_hbm [thread:$0]  %s535_s19, 128, %s1063_s10, [#allocation15]  }
 0x2b3   :  { %849 = dma.done.wait [#allocation4], 128  }
 0x2b4   :  { %850 = vsyncadd [#allocation4], 4294967168 }
 0x2b5   :  { %851 = dma.done.wait [#allocation15], 128  }
 0x2b6   :  { %852 = vsyncadd [#allocation15], 4294967168 }
 0x2b7   :  { %544 = vsyncpa [#allocation3], 1 }
 0x2b8   :  { %545 = vsyncpa [#allocation6], 1 }
 0x2b9   :  { %546 = vsyncpa [#allocation9], 1 }
 0x2ba   :  { %547 = vsyncpa [#allocation12], 1 }
 0x2bb   :  { %548 = vsyncpa [#allocation4], 1 }
 0x2bc   :  { %549 = vsyncpa [#allocation15], 1 }

</bundles_post_ra>
